<compile_context>
chip_gen: v5e
topology: v5e:2x2
jax: 0.10.0
libtpu: 0.0.40
codegen_flags: <defaults>
</compile_context>

<pallas_src>
import functools

import jax
import jax.numpy as jnp
from jax.experimental import pallas as pl
from jax.experimental.pallas import tpu as pltpu

_LANE = 128


def _round_up(a, m):
    return (a + m - 1) // m * m


def _channel_attention_kernel(x_ref, w1_ref, w2_ref, o_ref, sum_ref, max_ref,
                              *, hw_total, needs_mask):
    # x_ref  : (B_t, C, HW_TILE)  native dtype (f32 or bf16)
    # w1_ref : (C, Cr)  f32    (== fc1.weight[:, :, 0, 0].T)
    # w2_ref : (Cr, C)  f32    (== fc2.weight[:, :, 0, 0].T)
    # o_ref  : (B_t, C) f32
    # sum_ref/max_ref : (B_t, C, 128) f32 running accumulators (VMEM scratch)
    hw_step = pl.program_id(1)
    hw_tile = x_ref.shape[-1]

    @pl.when(hw_step == 0)
    def _init():
        sum_ref[...] = jnp.zeros(sum_ref.shape, jnp.float32)
        max_ref[...] = jnp.full(max_ref.shape, -jnp.inf, jnp.float32)

    # Elementwise (VPU) accumulation over 128-lane chunks of this HW tile.
    base = hw_step * hw_tile
    for j in range(hw_tile // _LANE):
        chunk = x_ref[:, :, j * _LANE:(j + 1) * _LANE].astype(jnp.float32)
        sum_ref[...] = sum_ref[...] + chunk        # wrapper zero-pads the tail
        if needs_mask:
            pos = base + j * _LANE + jax.lax.broadcasted_iota(
                jnp.int32, chunk.shape, 2)
            chunk = jnp.where(pos < hw_total, chunk, -jnp.inf)
        max_ref[...] = jnp.maximum(max_ref[...], chunk)

    @pl.when(hw_step == pl.num_programs(1) - 1)
    def _finalize():
        # Single cross-lane (XLU) reduce at the very end.
        avg = jnp.sum(sum_ref[...], axis=-1) * (1.0 / hw_total)   # (B_t, C)
        mx = jnp.max(max_ref[...], axis=-1)                       # (B_t, C)
        w1 = w1_ref[...]
        w2 = w2_ref[...]
        h = (jnp.maximum(jnp.dot(avg, w1, preferred_element_type=jnp.float32), 0.0)
             + jnp.maximum(jnp.dot(mx, w1, preferred_element_type=jnp.float32), 0.0))
        s = jnp.dot(h, w2, preferred_element_type=jnp.float32)    # fc2 folded (linear)
        o_ref[...] = jax.nn.sigmoid(s).astype(o_ref.dtype)


def channel_attention(x, w1_conv, w2_conv, *, hw_tile_cap=2048):
    """x: (B, C, H, W) NCHW (any float dtype; streamed in its native dtype).
    w1_conv: (Cr, C, 1, 1). w2_conv: (C, Cr, 1, 1).

    Returns the sigmoid attention map of shape (B, C, 1, 1), matching the
    PyTorch module's forward (it returns the attention map, not x * attn).
    """
    B, C, H, W = x.shape
    Cr = w1_conv.shape[0]
    hw = H * W

    hw_tile_cap = max(_LANE, (hw_tile_cap // _LANE) * _LANE)
    hw_tile = min(hw_tile_cap, _round_up(hw, _LANE))
    hw_pad = _round_up(hw, hw_tile)
    num_hw = hw_pad // hw_tile
    needs_mask = hw_pad != hw

    b_tile = B if B <= 8 else 8
    num_b = pl.cdiv(B, b_tile)

    # Stream x in its native dtype (no forced f32 upcast -> half the HBM bytes
    # for bf16 inputs); zero-pad the spatial tail so every grid block is full.
    x_flat = x.reshape(B, C, hw)
    if needs_mask:
        x_flat = jnp.pad(x_flat, ((0, 0), (0, 0), (0, hw_pad - hw)))

    # 1x1 conv on a (B, C, 1, 1) tensor is a matmul against weight[:, :, 0, 0].
    w1 = jnp.transpose(w1_conv[:, :, 0, 0]).astype(jnp.float32)   # (C, Cr)
    w2 = jnp.transpose(w2_conv[:, :, 0, 0]).astype(jnp.float32)   # (Cr, C)

    kernel = functools.partial(_channel_attention_kernel,
                               hw_total=hw, needs_mask=needs_mask)

    x_block_bytes = b_tile * C * hw_tile * x_flat.dtype.itemsize
    # Double-buffered x block + accumulators + weights, with headroom; keep the
    # cap <= 64 MiB so the same tiling also works on v7x's smaller VMEM.
    vmem_limit = int(min(64 * 1024 * 1024,
                         max(16 * 1024 * 1024, 4 * x_block_bytes)))

    out = pl.pallas_call(
        kernel,
        out_shape=jax.ShapeDtypeStruct((B, C), jnp.float32),
        grid=(num_b, num_hw),
        in_specs=[
            pl.BlockSpec((b_tile, C, hw_tile), lambda b, h: (b, 0, h)),
            pl.BlockSpec((C, Cr), lambda b, h: (0, 0)),
            pl.BlockSpec((Cr, C), lambda b, h: (0, 0)),
        ],
        out_specs=pl.BlockSpec((b_tile, C), lambda b, h: (b, 0)),
        scratch_shapes=[
            pltpu.VMEM((b_tile, C, _LANE), jnp.float32),   # running sum
            pltpu.VMEM((b_tile, C, _LANE), jnp.float32),   # running max
        ],
        compiler_params=pltpu.CompilerParams(
            dimension_semantics=("parallel", "arbitrary"),
            vmem_limit_bytes=vmem_limit,
        ),
    )(x_flat, w1, w2)

    return out.reshape(B, C, 1, 1)


def reference_channel_attention(x, w1_conv, w2_conv):
    """Pure-JAX reference mirroring the PyTorch forward."""
    B, C, H, W = x.shape
    avg = jnp.mean(x.astype(jnp.float32), axis=(2, 3))    # (B, C)
    mx = jnp.max(x.astype(jnp.float32), axis=(2, 3))      # (B, C)
    w1 = w1_conv[:, :, 0, 0].astype(jnp.float32)          # (Cr, C)
    w2 = w2_conv[:, :, 0, 0].astype(jnp.float32)          # (C, Cr)

    def mlp(v):
        h = jnp.maximum(v @ w1.T, 0.0)
        return h @ w2.T

    s = mlp(avg) + mlp(mx)
    return jax.nn.sigmoid(s).reshape(B, C, 1, 1)


def _check(x, w1_conv, w2_conv, **kwargs):
    out = jax.block_until_ready(channel_attention(x, w1_conv, w2_conv, **kwargs))
    ref = reference_channel_attention(x, w1_conv, w2_conv)
    assert out.shape == ref.shape
    assert jnp.allclose(out, ref, atol=1e-4, rtol=1e-4), "mismatch vs reference"


if __name__ == "__main__":
    key = jax.random.PRNGKey(0)
    kx, k1, k2, kx2, k3, k4 = jax.random.split(key, 6)

    # Case 1: C=64, reduction=16, HW=256; small hw_tile_cap forces a 2-step
    # streamed reduction over the spatial axis (exercises init/accum/finalize).
    B, C, H, W = 2, 64, 16, 16
    Cr = C // 16
    x = jax.random.normal(kx, (B, C, H, W), dtype=jnp.float32)
    w1_conv = jax.random.normal(k1, (Cr, C, 1, 1), dtype=jnp.float32) * (2.0 / C) ** 0.5
    w2_conv = jax.random.normal(k2, (C, Cr, 1, 1), dtype=jnp.float32) * (2.0 / Cr) ** 0.5
    _check(x, w1_conv, w2_conv, hw_tile_cap=128)

    # Case 2: odd spatial size (HW=169 not a multiple of 128) -> exercises the
    # zero-pad + -inf masking tail path.
    B2, C2, H2, W2 = 2, 32, 13, 13
    Cr2 = C2 // 8
    x2 = jax.random.normal(kx2, (B2, C2, H2, W2), dtype=jnp.float32)
    w1b = jax.random.normal(k3, (Cr2, C2, 1, 1), dtype=jnp.float32) * (2.0 / C2) ** 0.5
    w2b = jax.random.normal(k4, (C2, Cr2, 1, 1), dtype=jnp.float32) * (2.0 / Cr2) ** 0.5
    _check(x2, w1b, w2b, hw_tile_cap=128)

    print("KERNEL_OK")
</pallas_src>

<mosaic_0001>
module attributes {stable_mosaic.version = 11 : i64} {
  func.func @_channel_attention_kernel(%arg0: i32, %arg1: i32, %arg2: memref<2x64x128xf32, #tpu.memory_space<vmem>>, %arg3: memref<64x4xf32, #tpu.memory_space<vmem>>, %arg4: memref<4x64xf32, #tpu.memory_space<vmem>>, %arg5: memref<2x64xf32, #tpu.memory_space<vmem>>, %arg6: memref<2x64x128xf32, #tpu.memory_space<vmem>>, %arg7: memref<2x64x128xf32, #tpu.memory_space<vmem>>) attributes {dimension_semantics = [#tpu.dimension_semantics<parallel>, #tpu.dimension_semantics<arbitrary>], iteration_bounds = array<i64: 1, 2>, scalar_prefetch = 0 : i64, scratch_operands = 2 : i64, tpu.core_type = #tpu.core_type<tc>, window_params = [{transform_indices = @transform_0, window_bounds = array<i64: 2, 64, 128>}, {pipeline_mode = #tpu.pipeline_mode<synchronous>, transform_indices = @transform_1, window_bounds = array<i64: 64, 4>}, {pipeline_mode = #tpu.pipeline_mode<synchronous>, transform_indices = @transform_2, window_bounds = array<i64: 4, 64>}, {transform_indices = @transform_3, window_bounds = array<i64: 2, 64>}]} {
    %c0_i32 = arith.constant 0 : i32
    %0 = arith.cmpi eq, %arg1, %c0_i32 : i32
    %1 = arith.extui %0 : i1 to i32
    %c0_i32_0 = arith.constant 0 : i32
    %2 = arith.cmpi ne, %1, %c0_i32_0 : i32
    scf.if %2 {
      %cst = arith.constant 0.000000e+00 : f32
      %13 = vector.broadcast %cst : f32 to vector<2x64x128xf32>
      %c0_16 = arith.constant 0 : index
      %c0_17 = arith.constant 0 : index
      %c0_18 = arith.constant 0 : index
      %14 = vector.load %arg6[%c0_16, %c0_17, %c0_18] : memref<2x64x128xf32, #tpu.memory_space<vmem>>, vector<2x64x128xf32>
      tpu.vector_store %arg6[%c0_16, %c0_17, %c0_18], %13 {strides = array<i32>} : memref<2x64x128xf32, #tpu.memory_space<vmem>>, vector<2x64x128xf32>,
      %cst_19 = arith.constant 0xFF800000 : f32
      %15 = vector.broadcast %cst_19 : f32 to vector<2x64x128xf32>
      %c0_20 = arith.constant 0 : index
      %c0_21 = arith.constant 0 : index
      %c0_22 = arith.constant 0 : index
      %16 = vector.load %arg7[%c0_20, %c0_21, %c0_22] : memref<2x64x128xf32, #tpu.memory_space<vmem>>, vector<2x64x128xf32>
      tpu.vector_store %arg7[%c0_20, %c0_21, %c0_22], %15 {strides = array<i32>} : memref<2x64x128xf32, #tpu.memory_space<vmem>>, vector<2x64x128xf32>,
    } else {
    }
    %c0 = arith.constant 0 : index
    %c0_1 = arith.constant 0 : index
    %c0_2 = arith.constant 0 : index
    %3 = vector.load %arg2[%c0, %c0_1, %c0_2] : memref<2x64x128xf32, #tpu.memory_space<vmem>>, vector<2x64x128xf32>
    %c0_3 = arith.constant 0 : index
    %c0_4 = arith.constant 0 : index
    %c0_5 = arith.constant 0 : index
    %4 = vector.load %arg6[%c0_3, %c0_4, %c0_5] : memref<2x64x128xf32, #tpu.memory_space<vmem>>, vector<2x64x128xf32>
    %5 = arith.addf %4, %3 : vector<2x64x128xf32>
    %c0_6 = arith.constant 0 : index
    %c0_7 = arith.constant 0 : index
    %c0_8 = arith.constant 0 : index
    %6 = vector.load %arg6[%c0_6, %c0_7, %c0_8] : memref<2x64x128xf32, #tpu.memory_space<vmem>>, vector<2x64x128xf32>
    tpu.vector_store %arg6[%c0_6, %c0_7, %c0_8], %5 {strides = array<i32>} : memref<2x64x128xf32, #tpu.memory_space<vmem>>, vector<2x64x128xf32>,
    %c0_9 = arith.constant 0 : index
    %c0_10 = arith.constant 0 : index
    %c0_11 = arith.constant 0 : index
    %7 = vector.load %arg7[%c0_9, %c0_10, %c0_11] : memref<2x64x128xf32, #tpu.memory_space<vmem>>, vector<2x64x128xf32>
    %8 = arith.maximumf %7, %3 : vector<2x64x128xf32>
    %c0_12 = arith.constant 0 : index
    %c0_13 = arith.constant 0 : index
    %c0_14 = arith.constant 0 : index
    %9 = vector.load %arg7[%c0_12, %c0_13, %c0_14] : memref<2x64x128xf32, #tpu.memory_space<vmem>>, vector<2x64x128xf32>
    tpu.vector_store %arg7[%c0_12, %c0_13, %c0_14], %8 {strides = array<i32>} : memref<2x64x128xf32, #tpu.memory_space<vmem>>, vector<2x64x128xf32>,
    %c1_i32 = arith.constant 1 : i32
    %10 = arith.cmpi eq, %arg1, %c1_i32 : i32
    %11 = arith.extui %10 : i1 to i32
    %c0_i32_15 = arith.constant 0 : i32
    %12 = arith.cmpi ne, %11, %c0_i32_15 : i32
    scf.if %12 {
      %c0_16 = arith.constant 0 : index
      %c0_17 = arith.constant 0 : index
      %c0_18 = arith.constant 0 : index
      %13 = vector.load %arg6[%c0_16, %c0_17, %c0_18] : memref<2x64x128xf32, #tpu.memory_space<vmem>>, vector<2x64x128xf32>
      %cst = arith.constant dense<0.000000e+00> : vector<2x64xf32>
      %14 = vector.multi_reduction <add>, %13, %cst [2] : vector<2x64x128xf32> to vector<2x64xf32>
      %cst_19 = arith.constant 3.906250e-03 : f32
      %15 = vector.broadcast %cst_19 : f32 to vector<2x64xf32>
      %16 = arith.mulf %14, %15 : vector<2x64xf32>
      %c0_20 = arith.constant 0 : index
      %c0_21 = arith.constant 0 : index
      %c0_22 = arith.constant 0 : index
      %17 = vector.load %arg7[%c0_20, %c0_21, %c0_22] : memref<2x64x128xf32, #tpu.memory_space<vmem>>, vector<2x64x128xf32>
      %cst_23 = arith.constant dense<0xFF800000> : vector<2x64xf32>
      %18 = vector.multi_reduction <maximumf>, %17, %cst_23 [2] : vector<2x64x128xf32> to vector<2x64xf32>
      %c0_24 = arith.constant 0 : index
      %c0_25 = arith.constant 0 : index
      %19 = vector.load %arg3[%c0_24, %c0_25] : memref<64x4xf32, #tpu.memory_space<vmem>>, vector<64x4xf32>
      %c0_26 = arith.constant 0 : index
      %c0_27 = arith.constant 0 : index
      %20 = vector.load %arg4[%c0_26, %c0_27] : memref<4x64xf32, #tpu.memory_space<vmem>>, vector<4x64xf32>
      %cst_28 = arith.constant dense<0.000000e+00> : vector<2x4xf32>
      %21 = tpu.matmul %16, %19, %cst_28 {dimension_numbers = #tpu.dot_dimension_numbers<[1], [0], [0], [1], [0, 0, 1, 1], [], []>} : vector<2x64xf32>, vector<64x4xf32>, vector<2x4xf32> -> vector<2x4xf32>
      %cst_29 = arith.constant 0.000000e+00 : f32
      %22 = vector.broadcast %cst_29 : f32 to vector<2x4xf32>
      %23 = arith.maximumf %21, %22 : vector<2x4xf32>
      %cst_30 = arith.constant dense<0.000000e+00> : vector<2x4xf32>
      %24 = tpu.matmul %18, %19, %cst_30 {dimension_numbers = #tpu.dot_dimension_numbers<[1], [0], [0], [1], [0, 0, 1, 1], [], []>} : vector<2x64xf32>, vector<64x4xf32>, vector<2x4xf32> -> vector<2x4xf32>
      %cst_31 = arith.constant 0.000000e+00 : f32
      %25 = vector.broadcast %cst_31 : f32 to vector<2x4xf32>
      %26 = arith.maximumf %24, %25 : vector<2x4xf32>
      %27 = arith.addf %23, %26 : vector<2x4xf32>
      %cst_32 = arith.constant dense<0.000000e+00> : vector<2x64xf32>
      %28 = tpu.matmul %27, %20, %cst_32 {dimension_numbers = #tpu.dot_dimension_numbers<[1], [0], [0], [1], [0, 0, 1, 1], [], []>} : vector<2x4xf32>, vector<4x64xf32>, vector<2x64xf32> -> vector<2x64xf32>
      %29 = arith.negf %28 : vector<2x64xf32>
      %30 = math.exp %29 : vector<2x64xf32>
      %cst_33 = arith.constant 1.000000e+00 : f32
      %31 = vector.broadcast %cst_33 : f32 to vector<2x64xf32>
      %32 = arith.addf %31, %30 : vector<2x64xf32>
      %33 = arith.divf %31, %32 : vector<2x64xf32>
      %c0_34 = arith.constant 0 : index
      %c0_35 = arith.constant 0 : index
      %34 = vector.load %arg5[%c0_34, %c0_35] : memref<2x64xf32, #tpu.memory_space<vmem>>, vector<2x64xf32>
      tpu.vector_store %arg5[%c0_34, %c0_35], %33 {strides = array<i32>} : memref<2x64xf32, #tpu.memory_space<vmem>>, vector<2x64xf32>,
    } else {
    }
    return
  }
  func.func @transform_0(%arg0: i32, %arg1: i32) -> (i32, i32, i32) {
    %c0_i32 = arith.constant 0 : i32
    %c0_i32_0 = arith.constant 0 : i32
    return %arg0, %c0_i32, %arg1 : i32, i32, i32
  }
  func.func @transform_1(%arg0: i32, %arg1: i32) -> (i32, i32) {
    %c0_i32 = arith.constant 0 : i32
    %c0_i32_0 = arith.constant 0 : i32
    %c0_i32_1 = arith.constant 0 : i32
    return %c0_i32, %c0_i32_0 : i32, i32
  }
  func.func @transform_2(%arg0: i32, %arg1: i32) -> (i32, i32) {
    %c0_i32 = arith.constant 0 : i32
    %c0_i32_0 = arith.constant 0 : i32
    %c0_i32_1 = arith.constant 0 : i32
    return %c0_i32, %c0_i32_0 : i32, i32
  }
  func.func @transform_3(%arg0: i32, %arg1: i32) -> (i32, i32) {
    %c0_i32 = arith.constant 0 : i32
    %c0_i32_0 = arith.constant 0 : i32
    return %arg0, %c0_i32 : i32, i32
  }
}

</mosaic_0001>

<bundles_post_ra>
// kernel: tpu_custom_call.1
= control target key start
LH: loop header
LB: loop body
LE: loop exit
PB: predicated region body
PF: predicated region fallthrough
CT: control target
= control target key end

     0   :  { %8 = vsyncpa [#allocation5], 0  ;;  %s1298_s0 = inlined_call_operand.hbm [shape: f32[2,64,256], index: 0, kind: input, shape index: {}]   ;;  %s1299_s1 = inlined_call_operand.vmem [shape: f32[64,4], index: 1, kind: input, shape index: {}]   ;;  %s1300_s2 = inlined_call_operand.vmem [shape: f32[4,64], index: 2, kind: input, shape index: {}]   ;;  %s1301_s3 = inlined_call_operand.hbm [shape: f32[2,64], index: 3, kind: output, shape index: {}]  }
   0x1   :  { %10 = vsyncpa [#allocation5 + $0x1], 0 }
   0x2   :  { %11 = vsyncpa [#allocation6], 0  ;;  %s985_s12 = smov 0   ;;  %s987_s13 = smov 0  }
   0x3   :  { %s989_s14 = smov 0   ;;  %s991_s15 = smov 0  }
   0x4   :  { %s993_s16 = smov 0   ;;  %s995_s17 = smov 0  }
   0x5 LB: > { %s756_s18 = sadd.s32 4294967295, %s957_s17   ;;  %s26_s19 = sadd.s32 1, %s953_s16  ;;  %s957_s17 = sphi %s995_s17, %s17_s17   ;;  %s953_s16 = sphi %s993_s16, %s1308_s16   ;;  %s949_s15 = sphi %s991_s15, %s1307_s15   ;;  %s945_s14 = sphi %s989_s14, %s1306_s14   ;;  %s941_s13 = sphi %s987_s13, %s1305_s13   ;;  %s937_s12 = sphi %s985_s12, %s1304_s12  }
   0x6   : > { %p27_p0 = scmp.ge.s32.totalorder %s26_s19, 2  ;;  %s38_s20 = sadd.s32 1, %s945_s14 }
   0x7   : > { %p45_p1 = scmp.ne.s32.totalorder %s945_s14, %s941_s13  ;;  %p46_p2 = scmp.eq.s32.totalorder %s957_s17, 0 }
   0x8   : > { %s1310_s19 = smov (%p27_p0, %s26_s19), 0  ;;  %p51_p4 = scmp.ne.s32.totalorder %s941_s13, %s937_s12 }
   0x9   : > { %p1021_p3 = por %p46_p2, %p45_p1  ;;  %s34_s22 = ssub.s32 %s953_s16, %s1310_s19 }
   0xa   : > { %p52_p5 = scmp.eq.s32.totalorder %s756_s18, 0  ;;  %p36_p6 = scmp.eq.s32.totalorder %s34_s22, 0 }
   0xb   : > { %p784_p8 = scmp.lt.s32.totalorder %s957_s17, 2  ;;  %s149_s25 = sand.u32 1, %s945_s14  }
   0xc   : > { %p1030_p7 = por %p52_p5, %p51_p4  ;;  %s760_s26 = sshll.u32 %s953_s16, 3 }
   0xd   : > { %s1036_s24 = scalar_select %p36_p6, %s945_s14, %s38_s20  }
   0xe   : > { %s759_s27 = sshll.u32 %s149_s25, 7  ;;  %s160_s30 = scalar_lea.hbm %s1298_s0, %s760_s26 }
   0xf   : > { %s161_s4 = sshll.u32 %s160_s30, 4  ;;  %s153_s5 = scalar_lea.vmem [#allocation4], %s759_s27  ;;  %s162_s4 = int_to_ptr.hbm [resolvable:$true] %s161_s4 }
  0x10   : > { %s163_s6 = sshll.u32 %s153_s5, 4  ;;  %p781_p9 = pnand %p784_p8, %p1021_p3  ;;  %s164_s6 = int_to_ptr.vmem [resolvable:$true] %s163_s6 }
  0x11   : > { %p761_p10 = scmp.ge.s32.totalorder %s957_s17, 1  ;;  %s150_s7 = scalar_lea.sflag [#allocation5], %s149_s25 }
  0x12   : > { %s959_s8 = smov 256   ;;  %s960_s9 = smov 128  }
  0x13   : > { %s961_s10 = smov 8   ;;  %p171_p11 = scmp.lt.s32.totalorder %s957_s17, 3 }
  0x14   : > { %783 = dma.hbm_to_vmem [thread:$0]  (!%p781_p9), %s162_s4, 2048, %s164_s6, %s150_s7, %s959_s8, %s960_s9, %s961_s10  }
  0x15   : > { %p172_p12 = pnand %p761_p10, %p171_p11 }
  0x16   : > { %s177_s11 = sand.u32 (!%p172_p12), 1, %s941_s13  }
  0x17   : > { %175 = sbr.rel (%p172_p12) target bundleno = 603 (0x25b), region = 32  ;;  %s762_s12 = sshll.u32 (!%p172_p12), %s177_s11, 7 }
  0x18   : > { %s178_s20 = scalar_lea.sflag (!%p172_p12), [#allocation5], %s177_s11  ;;  %s1048_s22 = scalar_lea.vmem (!%p172_p12), [#allocation4], %s762_s12 }
  0x1c   : > { %928 = dma.done.wait (%p1030_p7), %s178_s20, 2048  }
  0x1d   : > { %930 = vsyncadd (%p1030_p7), %s178_s20, 4294965248  ;;  %p763_p13 = scmp.ne.s32.totalorder %s949_s15, 0 }
  0x1f   : > { %204 = sbr.rel (%p763_p13) target bundleno = 69 (0x45), region = 40 }
  0x24   : > { %v962_v0 = vmov 0.0   ;;  %v963_v1 = vmov -inf  }
  0x25   : > { %205 = vst [vmem:[#allocation2 + $0x30] sm:$0xff] %v962_v0 }
  0x26   : > { %206 = vst [vmem:[#allocation2] sm:$0xff] %v962_v0 }
  0x27   : > { %207 = vst [vmem:[#allocation2 + $0x58] sm:$0xff] %v962_v0 }
  0x28   : > { %208 = vst [vmem:[#allocation2 + $0x18] sm:$0xff] %v962_v0 }
  0x29   : > { %209 = vst [vmem:[#allocation2 + $0x50] sm:$0xff] %v962_v0 }
  0x2a   : > { %210 = vst [vmem:[#allocation2 + $0x68] sm:$0xff] %v962_v0 }
  0x2b   : > { %211 = vst [vmem:[#allocation2 + $0x8] sm:$0xff] %v962_v0 }
  0x2c   : > { %212 = vst [vmem:[#allocation2 + $0x48] sm:$0xff] %v962_v0 }
  0x2d   : > { %213 = vst [vmem:[#allocation2 + $0x40] sm:$0xff] %v962_v0 }
  0x2e   : > { %214 = vst [vmem:[#allocation2 + $0x20] sm:$0xff] %v962_v0 }
  0x2f   : > { %215 = vst [vmem:[#allocation2 + $0x10] sm:$0xff] %v962_v0 }
  0x30   : > { %216 = vst [vmem:[#allocation2 + $0x38] sm:$0xff] %v962_v0 }
  0x31   : > { %217 = vst [vmem:[#allocation2 + $0x60] sm:$0xff] %v962_v0 }
  0x32   : > { %218 = vst [vmem:[#allocation2 + $0x70] sm:$0xff] %v962_v0 }
  0x33   : > { %219 = vst [vmem:[#allocation2 + $0x78] sm:$0xff] %v962_v0 }
  0x34   : > { %220 = vst [vmem:[#allocation2 + $0x28] sm:$0xff] %v962_v0 }
  0x35   : > { %221 = vst [vmem:[#allocation3 + $0x28] sm:$0xff] %v963_v1 }
  0x36   : > { %222 = vst [vmem:[#allocation3 + $0x68] sm:$0xff] %v963_v1 }
  0x37   : > { %223 = vst [vmem:[#allocation3 + $0x10] sm:$0xff] %v963_v1 }
  0x38   : > { %224 = vst [vmem:[#allocation3 + $0x40] sm:$0xff] %v963_v1 }
  0x39   : > { %225 = vst [vmem:[#allocation3 + $0x48] sm:$0xff] %v963_v1 }
  0x3a   : > { %226 = vst [vmem:[#allocation3 + $0x30] sm:$0xff] %v963_v1 }
  0x3b   : > { %227 = vst [vmem:[#allocation3 + $0x70] sm:$0xff] %v963_v1 }
  0x3c   : > { %228 = vst [vmem:[#allocation3 + $0x38] sm:$0xff] %v963_v1 }
  0x3d   : > { %229 = vst [vmem:[#allocation3 + $0x20] sm:$0xff] %v963_v1 }
  0x3e   : > { %230 = vst [vmem:[#allocation3 + $0x78] sm:$0xff] %v963_v1 }
  0x3f   : > { %231 = vst [vmem:[#allocation3 + $0x18] sm:$0xff] %v963_v1 }
  0x40   : > { %232 = vst [vmem:[#allocation3 + $0x58] sm:$0xff] %v963_v1 }
  0x41   : > { %233 = vst [vmem:[#allocation3] sm:$0xff] %v963_v1 }
  0x42   : > { %234 = vst [vmem:[#allocation3 + $0x8] sm:$0xff] %v963_v1 }
  0x43   : > { %235 = vst [vmem:[#allocation3 + $0x60] sm:$0xff] %v963_v1 }
  0x44   : > { %236 = vst [vmem:[#allocation3 + $0x50] sm:$0xff] %v963_v1 }
  0x45 PF: > { %v1056_v2 = vld [vmem:[%s1048_s22] sm:$0xff]  ;;  %v253_v3 = vld [vmem:[#allocation2 + $0x30] sm:$0xff]  ;;  %v1059_v4 = vld [vmem:[%s1048_s22 + $0x8] sm:$0xff]  ;;  %p764_p0 = scmp.ne.s32.totalorder %s949_s15, 1 }
  0x46   : > { %v269_v5 = vadd.f32 %v253_v3, %v1056_v2  ;;  %v254_v6 = vld [vmem:[#allocation2] sm:$0xff]  ;;  %v1063_v7 = vld [vmem:[%s1048_s22 + $0x10] sm:$0xff]  ;;  %v255_v8 = vld [vmem:[#allocation2 + $0x58] sm:$0xff] }
  0x47   : > { %v270_v9 = vadd.f32 %v254_v6, %v1059_v4  ;;  %v271_v10 = vadd.f32 %v255_v8, %v1063_v7  ;;  %v1068_v11 = vld [vmem:[%s1048_s22 + $0x18] sm:$0xff]  ;;  %v1071_v13 = vld [vmem:[%s1048_s22 + $0x20] sm:$0xff]  ;;  %v257_v15 = vld [vmem:[#allocation2 + $0x50] sm:$0xff] }
  0x48   : > { %v256_v12 = vld [vmem:[#allocation2 + $0x18] sm:$0xff]  ;;  %285 = vst [vmem:[#allocation2 + $0x30] sm:$0xff] %v269_v5  ;;  %v1075_v16 = vld [vmem:[%s1048_s22 + $0x28] sm:$0xff]  ;;  %v273_v18 = vadd.f32 %v257_v15, %v1071_v13  ;;  %v1080_v20 = vld [vmem:[%s1048_s22 + $0x30] sm:$0xff] }
  0x49   : > { %v272_v14 = vadd.f32 %v256_v12, %v1068_v11  ;;  %v258_v17 = vld [vmem:[#allocation2 + $0x68] sm:$0xff]  ;;  %286 = vst [vmem:[#allocation2] sm:$0xff] %v270_v9  ;;  %v1083_v22 = vld [vmem:[%s1048_s22 + $0x38] sm:$0xff]  ;;  %v1087_v25 = vld [vmem:[%s1048_s22 + $0x40] sm:$0xff] }
  0x4a   : > { %v274_v19 = vadd.f32 %v258_v17, %v1075_v16  ;;  %v259_v21 = vld [vmem:[#allocation2 + $0x8] sm:$0xff]  ;;  %287 = vst [vmem:[#allocation2 + $0x58] sm:$0xff] %v271_v10  ;;  %v261_v26 = vld [vmem:[#allocation2 + $0x40] sm:$0xff]  ;;  %v1094_v30 = vld [vmem:[%s1048_s22 + $0x50] sm:$0xff] }
  0x4b   : > { %v275_v23 = vadd.f32 %v259_v21, %v1080_v20  ;;  %v260_v24 = vld [vmem:[#allocation2 + $0x48] sm:$0xff]  ;;  %288 = vst [vmem:[#allocation2 + $0x18] sm:$0xff] %v272_v14  ;;  %v262_v29 = vld [vmem:[#allocation2 + $0x20] sm:$0xff]  ;;  %v277_v31 = vadd.f32 %v261_v26, %v1087_v25  ;;  %v263_v32 = vld [vmem:[#allocation2 + $0x10] sm:$0xff] }
  0x4c   : > { %v276_v27 = vadd.f32 %v260_v24, %v1083_v22  ;;  %v1091_v28 = vld [vmem:[%s1048_s22 + $0x48] sm:$0xff]  ;;  %289 = vst [vmem:[#allocation2 + $0x50] sm:$0xff] %v273_v18  ;;  %v1098_v33 = vld [vmem:[%s1048_s22 + $0x58] sm:$0xff]  ;;  %v1102_v36 = vld [vmem:[%s1048_s22 + $0x60] sm:$0xff]  ;;  %v279_v38 = vadd.f32 %v263_v32, %v1094_v30 }
  0x4d   : > { %v264_v34 = vld [vmem:[#allocation2 + $0x38] sm:$0xff]  ;;  %290 = vst [vmem:[#allocation2 + $0x68] sm:$0xff] %v274_v19  ;;  %v278_v35 = vadd.f32 %v262_v29, %v1091_v28  ;;  %v265_v37 = vld [vmem:[#allocation2 + $0x60] sm:$0xff]  ;;  %v1106_v39 = vld [vmem:[%s1048_s22 + $0x68] sm:$0xff] }
  0x4e   : > { %291 = vst [vmem:[#allocation2 + $0x8] sm:$0xff] %v275_v23  ;;  %v266_v40 = vld [vmem:[#allocation2 + $0x70] sm:$0xff]  ;;  %v280_v41 = vadd.f32 %v264_v34, %v1098_v33  ;;  %v267_v43 = vld [vmem:[#allocation2 + $0x78] sm:$0xff]  ;;  %v281_v44 = vadd.f32 %v265_v37, %v1102_v36  ;;  %v268_v46 = vld [vmem:[#allocation2 + $0x28] sm:$0xff] }
  0x4f   : > { %292 = vst [vmem:[#allocation2 + $0x48] sm:$0xff] %v276_v27  ;;  %v251_v42 = vld [vmem:[%s1048_s22 + $0x70] sm:$0xff]  ;;  %v252_v45 = vld [vmem:[%s1048_s22 + $0x78] sm:$0xff]  ;;  %v282_v47 = vadd.f32 %v266_v40, %v1106_v39  ;;  %v301_v48 = vld [vmem:[#allocation3 + $0x28] sm:$0xff] }
  0x50   : > { %293 = vst [vmem:[#allocation2 + $0x40] sm:$0xff] %v277_v31  ;;  %v283_v49 = vadd.f32 %v267_v43, %v251_v42  ;;  %v302_v50 = vld [vmem:[#allocation3 + $0x68] sm:$0xff]  ;;  %v284_v51 = vadd.f32 %v268_v46, %v252_v45  ;;  %v303_v52 = vld [vmem:[#allocation3 + $0x10] sm:$0xff]  ;;  %v317_v53 = vmax.f32 %v301_v48, %v1056_v2  ;;  %v304_v54 = vld [vmem:[#allocation3 + $0x40] sm:$0xff] }
  0x51   : > { %294 = vst [vmem:[#allocation2 + $0x20] sm:$0xff] %v278_v35  ;;  %v318_v55 = vmax.f32 %v302_v50, %v1059_v4  ;;  %v305_v56 = vld [vmem:[#allocation3 + $0x48] sm:$0xff]  ;;  %v319_v57 = vmax.f32 %v303_v52, %v1063_v7  ;;  %v306_v58 = vld [vmem:[#allocation3 + $0x30] sm:$0xff]  ;;  %v320_v59 = vmax.f32 %v304_v54, %v1068_v11  ;;  %v308_v62 = vld [vmem:[#allocation3 + $0x38] sm:$0xff] }
  0x52   : > { %295 = vst [vmem:[#allocation2 + $0x10] sm:$0xff] %v279_v38  ;;  %v307_v60 = vld [vmem:[#allocation3 + $0x70] sm:$0xff]  ;;  %v321_v61 = vmax.f32 %v305_v56, %v1071_v13  ;;  %v322_v63 = vmax.f32 %v306_v58, %v1075_v16  ;;  %v309_v0 = vld [vmem:[#allocation3 + $0x20] sm:$0xff]  ;;  %v310_v2 = vld [vmem:[#allocation3 + $0x78] sm:$0xff]  ;;  %v324_v3 = vmax.f32 %v308_v62, %v1083_v22 }
  0x53   : > { %296 = vst [vmem:[#allocation2 + $0x38] sm:$0xff] %v280_v41  ;;  %v323_v1 = vmax.f32 %v307_v60, %v1080_v20  ;;  %v311_v4 = vld [vmem:[#allocation3 + $0x18] sm:$0xff]  ;;  %v325_v5 = vmax.f32 %v309_v0, %v1087_v25  ;;  %v326_v7 = vmax.f32 %v310_v2, %v1091_v28  ;;  %v313_v8 = vld [vmem:[#allocation3] sm:$0xff]  ;;  %v314_v10 = vld [vmem:[#allocation3 + $0x8] sm:$0xff] }
  0x54   : > { %297 = vst [vmem:[#allocation2 + $0x60] sm:$0xff] %v281_v44  ;;  %v312_v6 = vld [vmem:[#allocation3 + $0x58] sm:$0xff]  ;;  %v327_v9 = vmax.f32 %v311_v4, %v1094_v30  ;;  %v315_v12 = vld [vmem:[#allocation3 + $0x60] sm:$0xff]  ;;  %v329_v13 = vmax.f32 %v313_v8, %v1102_v36  ;;  %v316_v14 = vld [vmem:[#allocation3 + $0x50] sm:$0xff]  ;;  %v330_v15 = vmax.f32 %v314_v10, %v1106_v39 }
  0x55   : > { %298 = vst [vmem:[#allocation2 + $0x70] sm:$0xff] %v282_v47  ;;  %v328_v11 = vmax.f32 %v312_v6, %v1098_v33  ;;  %v331_v16 = vmax.f32 %v315_v12, %v251_v42  ;;  %v332_v17 = vmax.f32 %v316_v14, %v252_v45 }
  0x56   : > { %299 = vst [vmem:[#allocation2 + $0x78] sm:$0xff] %v283_v49 }
  0x57   : > { %300 = vst [vmem:[#allocation2 + $0x28] sm:$0xff] %v284_v51 }
  0x58   : > { %333 = vst [vmem:[#allocation3 + $0x28] sm:$0xff] %v317_v53 }
  0x59   : > { %334 = vst [vmem:[#allocation3 + $0x68] sm:$0xff] %v318_v55 }
  0x5a   : > { %335 = vst [vmem:[#allocation3 + $0x10] sm:$0xff] %v319_v57 }
  0x5b   : > { %336 = vst [vmem:[#allocation3 + $0x40] sm:$0xff] %v320_v59 }
  0x5c   : > { %337 = vst [vmem:[#allocation3 + $0x48] sm:$0xff] %v321_v61 }
  0x5d   : > { %338 = vst [vmem:[#allocation3 + $0x30] sm:$0xff] %v322_v63 }
  0x5e   : > { %339 = vst [vmem:[#allocation3 + $0x70] sm:$0xff] %v323_v1 }
  0x5f   : > { %340 = vst [vmem:[#allocation3 + $0x38] sm:$0xff] %v324_v3 }
  0x60   : > { %341 = vst [vmem:[#allocation3 + $0x20] sm:$0xff] %v325_v5 }
  0x61   : > { %342 = vst [vmem:[#allocation3 + $0x78] sm:$0xff] %v326_v7 }
  0x62   : > { %343 = vst [vmem:[#allocation3 + $0x18] sm:$0xff] %v327_v9 }
  0x63   : > { %344 = vst [vmem:[#allocation3 + $0x58] sm:$0xff] %v328_v11  ;;  %352 = sbr.rel (%p764_p0) target bundleno = 597 (0x255), region = 44 }
  0x64   : > { %345 = vst [vmem:[#allocation3] sm:$0xff] %v329_v13 }
  0x65   : > { %346 = vst [vmem:[#allocation3 + $0x8] sm:$0xff] %v330_v15 }
  0x66   : > { %347 = vst [vmem:[#allocation3 + $0x60] sm:$0xff] %v331_v16 }
  0x67   : > { %348 = vst [vmem:[#allocation3 + $0x50] sm:$0xff] %v332_v17 }
  0x68   : > { %v361_v18 = vld [vmem:[#allocation2 + $0x40] sm:$0xff]  ;;  %v355_v19 = vld [vmem:[#allocation2 + $0x58] sm:$0xff]  ;;  %v353_v20 = vld [vmem:[#allocation2 + $0x30] sm:$0xff]  ;;  %v490_v12 = vlaneseq  ;;  %vm495_vm0 = vcmask 130112   ;;  %vm499_vm1 = vcmask 195712   ;;  %vm503_vm2 = vcmask 261312  }
  0x69   : > { %385 = vadd.xlane.f32.xlu1 %v361_v18  ;;  %373 = vadd.xlane.f32.xlu2 %v355_v19  ;;  %v362_v21 = vld [vmem:[#allocation2 + $0x20] sm:$0xff]  ;;  %v363_v22 = vld [vmem:[#allocation2 + $0x10] sm:$0xff]  ;;  %v364_v24 = vld [vmem:[#allocation2 + $0x38] sm:$0xff]  ;;  %vm507_vm3 = vcmask 326912   ;;  %vm511_vm4 = vcmask 392512   ;;  %vm515_vm5 = vcmask 458112  }
  0x6a   : > { %369 = vadd.xlane.f32.xlu0 %v353_v20  ;;  %v354_v23 = vld [vmem:[#allocation2] sm:$0xff]  ;;  %v417_v25 = vld [vmem:[#allocation3 + $0x28] sm:$0xff]  ;;  %v356_v26 = vld [vmem:[#allocation2 + $0x18] sm:$0xff]  ;;  %v1170_v16 = vand.u32 127, %v490_v12  ;;  %vm519_vm6 = vcmask 523712   ;;  %vm536_vm7 = vcmask 1041409  }
  0x6b   : > { %v425_v27 = vld [vmem:[#allocation3 + $0x20] sm:$0xff]  ;;  %v426_v28 = vld [vmem:[#allocation3 + $0x78] sm:$0xff]  ;;  %v418_v29 = vld [vmem:[#allocation3 + $0x68] sm:$0xff]  ;;  %vm538_vm8 = vcmask 523264   ;;  %vm637_vm9 = vcmask 1043456   ;;  %vm633_vm10 = vcmask 31744  }
  0x6c   : > { %v365_v30 = vld [vmem:[#allocation2 + $0x60] sm:$0xff]  ;;  %v419_v31 = vld [vmem:[#allocation3 + $0x10] sm:$0xff]  ;;  %v358_v33 = vld [vmem:[#allocation2 + $0x68] sm:$0xff]  ;;  %v1173_v17 = vadd.s32 4294967288, %v1170_v16  ;;  %vm680_vm14 = vcmask 517120  }
  0x6d   : > { %v357_v32 = vld [vmem:[#allocation2 + $0x50] sm:$0xff]  ;;  %v427_v35 = vld [vmem:[#allocation3 + $0x18] sm:$0xff]  ;;  %v359_v37 = vld [vmem:[#allocation2 + $0x8] sm:$0xff] }
  0x6e   : > { %v366_v34 = vld [vmem:[#allocation2 + $0x70] sm:$0xff]  ;;  %v428_v36 = vld [vmem:[#allocation3 + $0x58] sm:$0xff]  ;;  %v420_v38 = vld [vmem:[#allocation3 + $0x40] sm:$0xff] }
  0x6f   : > { %v421_v39 = vld [vmem:[#allocation3 + $0x48] sm:$0xff]  ;;  %v429_v40 = vld [vmem:[#allocation3] sm:$0xff]  ;;  %v367_v41 = vld [vmem:[#allocation2 + $0x78] sm:$0xff] }
  0x70   : > { %v368_v42 = vld [vmem:[#allocation2 + $0x28] sm:$0xff]  ;;  %v422_v43 = vld [vmem:[#allocation3 + $0x30] sm:$0xff]  ;;  %v431_v46 = vld [vmem:[#allocation3 + $0x60] sm:$0xff] }
  0x71   : > { %387 = vadd.xlane.f32.xlu1 %v362_v21  ;;  %389 = vadd.xlane.f32.xlu2 %v363_v22  ;;  %v360_v44 = vld [vmem:[#allocation2 + $0x48] sm:$0xff]  ;;  %v423_v45 = vld [vmem:[#allocation3 + $0x70] sm:$0xff]  ;;  %v424_v49 = vld [vmem:[#allocation3 + $0x38] sm:$0xff]  ;;  %v1176_v21 = vadd.s32 4294967280, %v1170_v16 }
  0x72   : > { %371 = vadd.xlane.f32.xlu0 %v354_v23  ;;  %v430_v47 = vld [vmem:[#allocation3 + $0x8] sm:$0xff]  ;;  %v432_v48 = vld [vmem:[#allocation3 + $0x50] sm:$0xff]  ;;  %v472_v59 = vld [vmem:[%s1299_s1 + $0x38] sm:$0xff] }
  0x73   : > { %549 = vmatpush.msra.mxu0 %v472_v59  ;;  %619 = vmatpush.msra.mxu1 %v472_v59  ;;  %v471_v63 = vld [vmem:[%s1299_s1 + $0x30] sm:$0xff]  ;;  %v470_v0 = vld [vmem:[%s1299_s1 + $0x28] sm:$0xff]  ;;  %v469_v1 = vld [vmem:[%s1299_s1 + $0x20] sm:$0xff] }
  0x74   : > { %v468_v2 = vld [vmem:[%s1299_s1 + $0x18] sm:$0xff]  ;;  %v467_v6 = vld [vmem:[%s1299_s1 + $0x10] sm:$0xff]  ;;  %v466_v7 = vld [vmem:[%s1299_s1 + $0x8] sm:$0xff] }
  0x75   : > { %550 = vmatpush.msra.mxu0 %v471_v63  ;;  %620 = vmatpush.msra.mxu1 %v471_v63  ;;  %v465_v8 = vld [vmem:[%s1299_s1] sm:$0xff] }
  0x77   : > { %551 = vmatpush.msra.mxu0 %v470_v0  ;;  %621 = vmatpush.msra.mxu1 %v470_v0 }
  0x79   : > { %391 = vadd.xlane.f32.xlu1 %v364_v24  ;;  %433 = vmax.xlane.f32.xlu2 %v417_v25  ;;  %v1180_v25 = vadd.s32 4294967272, %v1170_v16 }
  0x7a   : > { %375 = vadd.xlane.f32.xlu0 %v356_v26  ;;  %552 = vmatpush.msra.mxu0 %v469_v1 }
  0x7b   : > { %622 = vmatpush.msra.mxu1 %v469_v1 }
  0x7c   : > { %553 = vmatpush.msra.mxu0 %v468_v2 }
  0x7d   : > { %623 = vmatpush.msra.mxu1 %v468_v2 }
  0x7e   : > { %554 = vmatpush.msra.mxu0 %v467_v6 }
  0x7f   : > { %624 = vmatpush.msra.mxu1 %v467_v6 }
  0x80   : > { %555 = vmatpush.msra.mxu0 %v466_v7 }
  0x81   : > { %449 = vmax.xlane.f32.xlu1 %v425_v27  ;;  %451 = vmax.xlane.f32.xlu2 %v426_v28 }
  0x82   : > { %435 = vmax.xlane.f32.xlu0 %v418_v29  ;;  %625 = vmatpush.msra.mxu1 %v466_v7 }
  0x83   : > { %556 = vmatpush.msra.mxu0 %v465_v8 }
  0x84   : > { %626 = vmatpush.msra.mxu1 %v465_v8 }
  0x89   : > { %393 = vadd.xlane.f32.xlu1 %v365_v30  ;;  %437 = vmax.xlane.f32.xlu2 %v419_v31  ;;  %v1188_v30 = vadd.s32 4294967264, %v1170_v16 }
  0x8a   : > { %377 = vadd.xlane.f32.xlu0 %v357_v32 }
  0x91   : > { %379 = vadd.xlane.f32.xlu1 %v358_v33  ;;  %395 = vadd.xlane.f32.xlu2 %v366_v34 }
  0x92   : > { %453 = vmax.xlane.f32.xlu0 %v427_v35 }
  0x99   : > { %455 = vmax.xlane.f32.xlu1 %v428_v36  ;;  %381 = vadd.xlane.f32.xlu2 %v359_v37 }
  0x9a   : > { %439 = vmax.xlane.f32.xlu0 %v420_v38  ;;  %v1194_v38 = vadd.s32 4294967256, %v1170_v16 }
  0xa1   : > { %441 = vmax.xlane.f32.xlu1 %v421_v39  ;;  %457 = vmax.xlane.f32.xlu2 %v429_v40 }
  0xa2   : > { %397 = vadd.xlane.f32.xlu0 %v367_v41 }
  0xa9   : > { %399 = vadd.xlane.f32.xlu1 %v368_v42  ;;  %443 = vmax.xlane.f32.xlu2 %v422_v43 }
  0xaa   : > { %383 = vadd.xlane.f32.xlu0 %v360_v44 }
  0xb1   : > { %445 = vmax.xlane.f32.xlu1 %v423_v45  ;;  %461 = vmax.xlane.f32.xlu2 %v431_v46  ;;  %v1201_v46 = vadd.s32 4294967248, %v1170_v16 }
  0xb2   : > { %459 = vmax.xlane.f32.xlu0 %v430_v47 }
  0xb9   : > { %463 = vmax.xlane.f32.xlu1 %v432_v48 }
  0xba   : > { %447 = vmax.xlane.f32.xlu0 %v424_v49 }
  0xdc   : > { %v386_v50 = vpop.xlane.xlu1 %385  ;;  %v1128_v51 = vpop.xlane.xlu2 %373 }
  0xdd   : > { %v370_v52 = vpop.xlane.xlu0 %369  ;;  %v409_v20 = vmul.f32 0.00390625, %v386_v50  ;;  %v403_v33 = vmul.f32 0.00390625, %v1128_v51 }
  0xde   : > { %v401_v22 = vmul.f32 0.00390625, %v370_v52 }
  0xdf   : > { %v521_v32 = vperm.slane %v409_v20, %v1170_v16  ;;  %v498_v48 = vperm.slane %v403_v33, %v1176_v21 }
  0xe0   : > { %v492_v36 = vperm.slane %v401_v22, %v1170_v16 }
  0xe4   : > { %v388_v53 = vpop.xlane.xlu1 %387  ;;  %v390_v54 = vpop.xlane.xlu2 %389 }
  0xe5   : > { %v372_v55 = vpop.xlane.xlu0 %371  ;;  %v410_v18 = vmul.f32 0.00390625, %v388_v53  ;;  %v411_v24 = vmul.f32 0.00390625, %v390_v54  ;;  %v1209_v53 = vadd.s32 4294967240, %v1170_v16 }
  0xe6   : > { %v402_v19 = vmul.f32 0.00390625, %v372_v55 }
  0xe7   : > { %v522_v23 = vperm.slane %v410_v18, %v1173_v17  ;;  %v524_v41 = vperm.slane %v411_v24, %v1176_v21 }
  0xe8   : > { %v494_v28 = vperm.slane %v402_v19, %v1173_v17 }
  0xe9   : > { %v523_v40 = vsel %vm495_vm0, %v522_v23, %v521_v32 }
  0xea   : > { %v496_v44 = vsel %vm495_vm0, %v494_v28, %v492_v36  ;;  %v525_v54 = vsel %vm499_vm1, %v524_v41, %v523_v40 }
  0xeb   : > { %v500_v55 = vsel %vm499_vm1, %v498_v48, %v496_v44 }
  0xec   : > { %v392_v56 = vpop.xlane.xlu1 %391  ;;  %v1130_v57 = vpop.xlane.xlu2 %433 }
  0xed   : > { %v376_v58 = vpop.xlane.xlu0 %375  ;;  %v412_v29 = vmul.f32 0.00390625, %v392_v56 }
  0xee   : > { %v404_v34 = vmul.f32 0.00390625, %v376_v58 }
  0xef   : > { %v526_v45 = vperm.slane %v412_v29, %v1180_v25 }
  0xf0   : > { %v502_v49 = vperm.slane %v404_v34, %v1180_v25  ;;  %v578_v34 = vperm.slane %v1130_v57, %v1170_v16 }
  0xf1   : > { %v527_v63 = vsel %vm503_vm2, %v526_v45, %v525_v54 }
  0xf4   : > { %v1135_v60 = vpop.xlane.xlu1 %449  ;;  %v1137_v61 = vpop.xlane.xlu2 %451 }
  0xf5   : > { %v1139_v62 = vpop.xlane.xlu0 %435  ;;  %v593_v23 = vperm.slane %v1135_v60, %v1170_v16  ;;  %v594_v24 = vperm.slane %v1137_v61, %v1173_v17 }
  0xf6   : > { %v579_v60 = vperm.slane %v1139_v62, %v1173_v17 }
  0xf8   : > { %v580_v16 = vsel %vm495_vm0, %v579_v60, %v578_v34 }
  0xfc   : > { %v394_v3 = vpop.xlane.xlu1 %393  ;;  %v1153_v4 = vpop.xlane.xlu2 %437 }
  0xfd   : > { %v378_v5 = vpop.xlane.xlu0 %377  ;;  %v413_v35 = vmul.f32 0.00390625, %v394_v3 }
  0xfe   : > { %v405_v37 = vmul.f32 0.00390625, %v378_v5  ;;  %v504_v5 = vsel %vm503_vm2, %v502_v49, %v500_v55  ;;  %v473_v49 = vld [vmem:[%s1300_s2] sm:$0xf] }
  0xff   : > { %v528_v50 = vperm.slane %v413_v35, %v1188_v30  ;;  %v595_v35 = vsel %vm495_vm0, %v594_v24, %v593_v23  ;;  %767 = vmatpush.msk.msra.mxu2 %vm637_vm9, %v473_v49 }
 0x100   : > { %v506_v51 = vperm.slane %v405_v37, %v1188_v30 }
 0x101   : > { %v529_v6 = vsel %vm507_vm3, %v528_v50, %v527_v63 }
 0x102   : > { %v508_v8 = vsel %vm507_vm3, %v506_v51, %v504_v5 }
 0x104   : > { %v380_v9 = vpop.xlane.xlu1 %379  ;;  %v396_v10 = vpop.xlane.xlu2 %395 }
 0x105   : > { %v1164_v11 = vpop.xlane.xlu0 %453  ;;  %v414_v39 = vmul.f32 0.00390625, %v396_v10  ;;  %v406_v42 = vmul.f32 0.00390625, %v380_v9 }
 0x106   : > { %v596_v29 = vperm.slane %v1164_v11, %v1176_v21  ;;  %v581_v11 = vperm.slane %v1153_v4, %v1176_v21 }
 0x107   : > { %v530_v52 = vperm.slane %v414_v39, %v1194_v38  ;;  %v510_v56 = vperm.slane %v406_v42, %v1194_v38 }
 0x108   : > { %v582_v21 = vsel %vm499_vm1, %v581_v11, %v580_v16 }
 0x109   : > { %v531_v9 = vsel %vm511_vm4, %v530_v52, %v529_v6  ;;  %v512_v12 = vsel %vm511_vm4, %v510_v56, %v508_v8 }
 0x10c   : > { %v1166_v13 = vpop.xlane.xlu1 %455  ;;  %v382_v14 = vpop.xlane.xlu2 %381 }
 0x10d   : > { %v1168_v15 = vpop.xlane.xlu0 %439  ;;  %v407_v47 = vmul.f32 0.00390625, %v382_v14  ;;  %v598_v32 = vperm.slane %v1166_v13, %v1180_v25  ;;  %v597_v13 = vsel %vm499_vm1, %v596_v29, %v595_v35 }
 0x10e   : > { %v583_v39 = vperm.slane %v1168_v15, %v1180_v25 }
 0x10f   : > { %v514_v0 = vperm.slane %v407_v47, %v1201_v46  ;;  %v599_v57 = vsel %vm503_vm2, %v598_v32, %v597_v13 }
 0x110   : > { %v584_v15 = vsel %vm503_vm2, %v583_v39, %v582_v21 }
 0x111   : > { %v516_v19 = vsel %vm515_vm5, %v514_v0, %v512_v12 }
 0x114   : > { %v1182_v26 = vpop.xlane.xlu1 %441  ;;  %v1184_v27 = vpop.xlane.xlu2 %457 }
 0x115   : > { %v398_v31 = vpop.xlane.xlu0 %397  ;;  %v600_v61 = vperm.slane %v1184_v27, %v1188_v30  ;;  %v585_v62 = vperm.slane %v1182_v26, %v1188_v30 }
 0x116   : > { %v415_v43 = vmul.f32 0.00390625, %v398_v31 }
 0x117   : > { %v601_v17 = vsel %vm507_vm3, %v600_v61, %v599_v57  ;;  %v586_v42 = vsel %vm507_vm3, %v585_v62, %v584_v15 }
 0x118   : > { %v532_v58 = vperm.slane %v415_v43, %v1201_v46 }
 0x11a   : > { %v533_v18 = vsel %vm515_vm5, %v532_v58, %v531_v9 }
 0x11c   : > { %v400_v59 = vpop.xlane.xlu1 %399  ;;  %v444_v2 = vpop.xlane.xlu2 %443 }
 0x11d   : > { %v416_v1 = vmul.f32 0.00390625, %v400_v59  ;;  %v384_v3 = vpop.xlane.xlu0 %383  ;;  %v587_v27 = vperm.slane %v444_v2, %v1194_v38 }
 0x11e   : > { %v408_v7 = vmul.f32 0.00390625, %v384_v3 }
 0x11f   : > { %v534_v10 = vperm.slane %v416_v1, %v1209_v53  ;;  %v588_v43 = vsel %vm511_vm4, %v587_v27, %v586_v42 }
 0x120   : > { %v518_v14 = vperm.slane %v408_v7, %v1209_v53 }
 0x121   : > { %v535_v20 = vsel %vm519_vm6, %v534_v10, %v533_v18 }
 0x122   : > { %v520_v22 = vsel %vm519_vm6, %v518_v14, %v516_v19 }
 0x123   : > { %v537_v28 = vsel %vm536_vm7, %v535_v20, %v520_v22 }
 0x124   : > { %765 = vmatmul.msk.f32.vlgmr.msra.gmra.mxu0 %vm538_vm8, %v537_v28  ;;  %v446_v31 = vpop.xlane.xlu1 %445  ;;  %v462_v37 = vpop.xlane.xlu2 %461 }
 0x125   : > { %v460_v33 = vpop.xlane.xlu0 %459  ;;  %v604_v4 = vperm.slane %v462_v37, %v1201_v46  ;;  %v589_v40 = vperm.slane %v446_v31, %v1201_v46 }
 0x126   : > { %v602_v36 = vperm.slane %v460_v33, %v1194_v38 }
 0x127   : > { %v590_v45 = vsel %vm515_vm5, %v589_v40, %v588_v43 }
 0x128   : > { %v603_v41 = vsel %vm511_vm4, %v602_v36, %v601_v17 }
 0x129   : > { %v605_v38 = vsel %vm515_vm5, %v604_v4, %v603_v41 }
 0x12c   : > { %v464_v25 = vpop.xlane.xlu1 %463 }
 0x12d   : > { %v606_v26 = vperm.slane %v464_v25, %v1209_v53  ;;  %v448_v30 = vpop.xlane.xlu0 %447 }
 0x12e   : > { %v591_v44 = vperm.slane %v448_v30, %v1209_v53 }
 0x12f   : > { %v607_v46 = vsel %vm519_vm6, %v606_v26, %v605_v38 }
 0x130   : > { %v592_v47 = vsel %vm519_vm6, %v591_v44, %v590_v45 }
 0x131   : > { %v608_v48 = vsel %vm536_vm7, %v607_v46, %v592_v47 }
 0x132   : > { %766 = vmatmul.msk.f32.vlgmr.msra.gmra.mxu1 %vm538_vm8, %v608_v48 }
 0x1a1   : > { %v558_v50 = vpop.f32.mrf.mxu0 }
 0x1a2   : > { %v561_v52 = vmax.f32 %v558_v50, 0.0 }
 0x1af   : > { %v628_v51 = vpop.f32.mrf.mxu1 }
 0x1b0   : > { %v631_v53 = vmax.f32 %v628_v51, 0.0 }
 0x1b2   : > { %v632_v54 = vadd.f32 %v631_v53, %v561_v52 }
 0x1b4   : > { %768 = vmatmul.msk.f32.vlgmr.msra.gmra.mxu2 %vm633_vm10, %v632_v54 }
 0x237   : > { %v658_v55 = vpop.f32.mrf.mxu2 }
 0x238   : > { %v769_v56 = vmul.f32 -1.442695, %v658_v55 }
 0x23a   : > { %841 = vpow2.f32 %v769_v56 }
 0x240   : > { %v842_v58 = vpop.eup %841 }
 0x241   : > { %v664_v59 = vadd.f32 1.0, %v842_v58 }
 0x243   : > { %843 = vrcp.f32 %v664_v59  ;;  %v676_v2 = vand.u32 2147483648, %v664_v59  ;;  %v674_v5 = vand.u32 2147483647, %v664_v59  ;;  %vm670_vm12 = vweird.f32 %v664_v59 }
 0x245   : > { %v677_v7 = vor.u32 1.1754944e-38, %v676_v2  ;;  %vm675_vm15 = vcmp.eq.f32.partialorder %v674_v5, 8.507059e+37 }
 0x249   : > { %v844_v63 = vpop.eup %843 }
 0x24a   : > { %v666_v0 = vmul.f32 %v844_v63, %v664_v59  ;;  %vm671_vm11 = vweird.f32 %v844_v63 }
 0x24b   : > { %vm672_vm13 = vmor %vm670_vm12, %vm671_vm11 }
 0x24c   : > { %v667_v1 = vsub.f32 1.0, %v666_v0 }
 0x24e   : > { %v668_v3 = vmul.f32 %v844_v63, %v667_v1 }
 0x250   : > { %v669_v6 = vadd.f32 %v844_v63, %v668_v3 }
 0x252   : > { %v673_v8 = vsel %vm672_vm13, %v844_v63, %v669_v6 }
 0x253   : > { %v678_v9 = vsel %vm675_vm15, %v677_v7, %v673_v8 }
 0x254   : > { %681 = vst.msk [vmem:[#allocation7] sm:$0x3] %vm680_vm14, %v678_v9 }
 0x255 PF: > { %p785_p1 = scmp.eq.s32.totalorder %s756_s18, 1  ;;  %s692_s15 = sshll.u32 %s1301_s3, 4  ;;  %s693_s15 = int_to_ptr.hbm [resolvable:$true] %s692_s15 }
 0x256   : > { %s964_s21 = smov [#allocation7]  }
 0x257   : > { %s690_s23 = sshll.u32 %s964_s21, 4  ;;  %s691_s23 = int_to_ptr.vmem [resolvable:$true] %s690_s23 }
 0x258   : > { %777 = dma.vmem_to_hbm [thread:$0]  (%p785_p1), %s691_s23, 32, %s693_s15, [#allocation6]  }
 0x259   : > { %932 = dma.done.wait (%p785_p1), [#allocation6], 32  }
 0x25a   : > { %934 = vsyncadd (%p785_p1), [#allocation6], 4294967264 }
 0x25b PF: > { %s17_s17 = sadd.s32 1, %s957_s17   ;;  %s1304_s12 = smov %s941_s13 }
 0x25c   : > { %p14_p2 = scmp.ge.s32.totalorder %s17_s17, 4   ;;  %s1305_s13 = smov %s945_s14 }
 0x25d   : > { %s1306_s14 = smov %s1036_s24  ;;  %s1307_s15 = smov %s953_s16 }
 0x25e   : > { %s1308_s16 = smov %s1310_s19  ;;  %16 = sbr.rel (!%p14_p2) target bundleno = 5 (0x5), region = 78 }
 0x263   :  { %706 = vsyncpa [#allocation5], 1 }
 0x264   :  { %708 = vsyncpa [#allocation5 + $0x1], 1 }
 0x265   :  { %709 = vsyncpa [#allocation6], 1 }
 0x266   :  { %711 = vsyncpa [#allocation6 + $0x1], 1 }

</bundles_post_ra>
